<compile_context>
chip_gen: v7x
topology: tpu7x:2x2x1
jax: 0.10.0
libtpu: 0.0.40
codegen_flags: <defaults>
</compile_context>

<pallas_src>
import functools

import jax
import jax.numpy as jnp
from jax.experimental import pallas as pl
from jax.experimental.pallas import tpu as pltpu

GAMMA = 1.5
ALPHA = 0.25

LANES = 128
SUBLANES = 8


def _round_down(a, b):
    return (a // b) * b


def _select_config():
    """Per-TPU-generation (max_tile_rows, vmem_limit_bytes)."""
    kind = ""
    try:
        kind = jax.devices()[0].device_kind.lower()
    except Exception:
        pass
    if "v7" in kind or "7x" in kind:
        # v7x: only 64 MiB VMEM per TC -> 8192-row tiles (2 inputs x 2 bufs
        # x 4 MiB = 16 MiB working set); keep the scoped limit <= 48 MiB.
        return 8192, 48 * 1024 * 1024
    if "v6" in kind:
        # v6e: 128 MiB VMEM; 4 MiB blocks make the ~0.35us/step overhead <10%.
        return 8192, 64 * 1024 * 1024
    if "v5e" in kind or "v5 lite" in kind or "v5lite" in kind:
        # v5e: scoped-VMEM default is 16 MiB; 4096-row tiles (8 MiB working
        # set) with an explicit 32 MiB limit capture ~all of the tiling win.
        return 4096, 32 * 1024 * 1024
    # Unknown part: conservative but still large blocks.
    return 4096, 32 * 1024 * 1024


def _row_align(*dtypes):
    """Block-row alignment: 8 for f32, 16 for bf16, 32 for int8 inputs."""
    itemsize = min(jnp.dtype(d).itemsize for d in dtypes)
    return max(SUBLANES, 32 // max(1, itemsize))


def _modulating_factor(one_minus_pt, gamma):
    """(1 - p_t) ** gamma with cheap decompositions for common gammas."""
    if gamma == 1.5:
        return one_minus_pt * jnp.sqrt(one_minus_pt)
    if gamma == 2.0:
        return one_minus_pt * one_minus_pt
    if gamma == 1.0:
        return one_minus_pt
    if gamma == 0.0:
        return jnp.ones_like(one_minus_pt)
    return one_minus_pt ** gamma


def _focal_loss_kernel(pred_ref, true_ref, out_ref, *, gamma, alpha):
    """One (tile_rows, 128) block -> one (8, 128) vreg-shaped partial sum."""
    x = pred_ref[...].astype(jnp.float32)
    y = true_ref[...].astype(jnp.float32)

    # One shared EUP exp: e = exp(-|x|) feeds both the numerically stable
    # BCE-with-logits and the sigmoid.
    e = jnp.exp(-jnp.abs(x))

    # BCEWithLogitsLoss (reduction='none'):  max(x,0) - x*y + log(1 + e)
    bce = jnp.maximum(x, 0.0) - x * y + jnp.log1p(e)

    # sigmoid(x) = 1/(1+e) for x>=0 else e/(1+e), with e == exp(-|x|).
    # approx vrcp (single EUP push in a free slot) + one Newton step on the
    # VPU gives ~f32-exact results.
    d = 1.0 + e
    r = pl.reciprocal(d, approx=True)
    r = r * (2.0 - d * r)
    pred_prob = jnp.where(x >= 0.0, r, e * r)

    p_t = y * pred_prob + (1.0 - y) * (1.0 - pred_prob)
    alpha_factor = y * alpha + (1.0 - y) * (1.0 - alpha)
    # Clamp: reciprocal rounding could push p_t a hair above 1.0, which would
    # feed sqrt() a negative.
    one_m = jnp.maximum(1.0 - p_t, 0.0)
    loss = bce * alpha_factor * _modulating_factor(one_m, gamma)

    # Pure-VPU reduction to one vreg: every (8,128) sub-tile of the block stays
    # intact under this reshape, so no XLU traffic.  Cross-lane reduce of the
    # tiny (n_blocks, 8, 128) partials happens in the wrapper.
    out_ref[0] = jnp.sum(loss.reshape(-1, SUBLANES, LANES), axis=0)


def _focal_sum_jax(x, y, gamma, alpha):
    """Pure-JAX focal-loss sum for the sub-block tail (< one block)."""
    x = x.astype(jnp.float32)
    y = y.astype(jnp.float32)
    bce = jnp.maximum(x, 0.0) - x * y + jnp.log1p(jnp.exp(-jnp.abs(x)))
    p = jax.nn.sigmoid(x)
    p_t = y * p + (1.0 - y) * (1.0 - p)
    alpha_factor = y * alpha + (1.0 - y) * (1.0 - alpha)
    one_m = jnp.maximum(1.0 - p_t, 0.0)
    return jnp.sum(bce * alpha_factor * _modulating_factor(one_m, gamma),
                   dtype=jnp.float32)


@functools.partial(
    jax.jit, static_argnames=("gamma", "alpha", "reduction", "max_tile_rows"))
def focal_loss(pred, true, *, gamma=GAMMA, alpha=ALPHA, reduction="mean",
               max_tile_rows=None):
    """Focal loss over BCE-with-logits, reduced to a scalar ('mean' or 'sum')."""
    assert pred.shape == true.shape
    if reduction not in ("mean", "sum"):
        # TODO(synk): reduction='none' (elementwise output) not implemented in
        # this scalar-reduction kernel.
        raise NotImplementedError("Only 'mean' and 'sum' reductions supported.")

    total = pred.size
    pred_flat = jnp.ravel(pred)
    true_flat = jnp.ravel(true)

    cfg_rows, vmem_limit = _select_config()
    if max_tile_rows is not None:
        cfg_rows = max_tile_rows

    align = _row_align(pred.dtype, true.dtype)
    rows_exact = total // LANES
    tile_rows = min(cfg_rows, _round_down(rows_exact, align))

    total_sum = jnp.float32(0.0)
    bulk = 0
    if tile_rows > 0:
        n_blocks = rows_exact // tile_rows
        bulk_rows = n_blocks * tile_rows
        bulk = bulk_rows * LANES

        # Lane-dense block-aligned prefix: no padding, no full-array copy.
        pred2d = pred_flat[:bulk].reshape(bulk_rows, LANES)
        true2d = true_flat[:bulk].reshape(bulk_rows, LANES)

        kernel = functools.partial(_focal_loss_kernel, gamma=gamma, alpha=alpha)
        in_map = lambda i: (i, 0)

        bytes_accessed = bulk * (pred2d.dtype.itemsize + true2d.dtype.itemsize)
        bytes_accessed += n_blocks * SUBLANES * LANES * 4
        cost = pl.CostEstimate(flops=24 * bulk, transcendentals=4 * bulk,
                               bytes_accessed=bytes_accessed)

        partials = pl.pallas_call(
            kernel,
            out_shape=jax.ShapeDtypeStruct((n_blocks, SUBLANES, LANES),
                                           jnp.float32),
            grid_spec=pltpu.PrefetchScalarGridSpec(
                num_scalar_prefetch=0,
                grid=(n_blocks,),
                in_specs=[
                    pl.BlockSpec((tile_rows, LANES), in_map),
                    pl.BlockSpec((tile_rows, LANES), in_map),
                ],
                out_specs=pl.BlockSpec((1, SUBLANES, LANES),
                                       lambda i: (i, 0, 0)),
            ),
            # TODO(synk): on v7x verify the "parallel" axis really shards over
            # both TensorCores; if not, switch to pltpu.CORE_PARALLEL or an
            # explicit pl.core_map over a 2-core mesh.
            compiler_params=pltpu.CompilerParams(
                dimension_semantics=("parallel",),
                vmem_limit_bytes=vmem_limit),
            cost_estimate=cost,
        )(pred2d, true2d)

        total_sum = jnp.sum(partials, dtype=jnp.float32)

    if bulk < total:
        # Sub-block remainder handled with plain fused XLA ops (reads only the
        # tail slice, never rewrites the full arrays in HBM).
        total_sum = total_sum + _focal_sum_jax(
            pred_flat[bulk:], true_flat[bulk:], gamma, alpha)

    if reduction == "mean":
        return total_sum / jnp.float32(total)
    return total_sum


def focal_loss_ref(pred, true, *, gamma=GAMMA, alpha=ALPHA, reduction="mean"):
    """Pure-JAX reference matching the PyTorch module (BCEWithLogits)."""
    x = pred.astype(jnp.float32)
    y = true.astype(jnp.float32)
    bce = jnp.maximum(x, 0.0) - x * y + jnp.log1p(jnp.exp(-jnp.abs(x)))
    p = jax.nn.sigmoid(x)
    p_t = y * p + (1.0 - y) * (1.0 - p)
    alpha_factor = y * alpha + (1.0 - y) * (1.0 - alpha)
    mod = (1.0 - p_t) ** gamma
    loss = bce * alpha_factor * mod
    return jnp.mean(loss) if reduction == "mean" else jnp.sum(loss)


if __name__ == "__main__":
    key = jax.random.PRNGKey(0)
    k1, k2, k3, k4, k5, k6 = jax.random.split(key, 6)

    # Case 1: NCHW, batch=2, channels=4, spatial=16x16 (lane-aligned total).
    pred = jax.random.normal(k1, (2, 4, 16, 16), dtype=jnp.float32)
    true = (jax.random.uniform(k2, (2, 4, 16, 16)) > 0.5).astype(jnp.float32)
    out = jax.block_until_ready(focal_loss(pred, true))
    ref = focal_loss_ref(pred, true)
    assert jnp.allclose(out, ref, rtol=5e-4, atol=1e-6), (out, ref)

    # Case 2: odd-sized input -> kernel bulk + pure-JAX tail path.
    pred2 = jax.random.normal(k3, (3, 5, 7, 11), dtype=jnp.float32)
    true2 = (jax.random.uniform(k4, (3, 5, 7, 11)) > 0.5).astype(jnp.float32)
    out2 = jax.block_until_ready(focal_loss(pred2, true2))
    ref2 = focal_loss_ref(pred2, true2)
    assert jnp.allclose(out2, ref2, rtol=5e-4, atol=1e-6), (out2, ref2)

    # Case 3: multi-block parallel grid (small forced tile) + 'sum' reduction.
    pred3 = jax.random.normal(k5, (2, 4, 64, 64), dtype=jnp.float32)
    true3 = (jax.random.uniform(k6, (2, 4, 64, 64)) > 0.5).astype(jnp.float32)
    out3 = jax.block_until_ready(
        focal_loss(pred3, true3, reduction="sum", max_tile_rows=64))
    ref3 = focal_loss_ref(pred3, true3, reduction="sum")
    assert jnp.allclose(out3, ref3, rtol=5e-4, atol=1e-4), (out3, ref3)

    print("KERNEL_OK")
</pallas_src>

<mosaic_0001>
module attributes {stable_mosaic.version = 11 : i64} {
  func.func @_focal_loss_kernel(%arg0: i32, %arg1: memref<16x128xf32, #tpu.memory_space<vmem>>, %arg2: memref<16x128xf32, #tpu.memory_space<vmem>>, %arg3: memref<1x8x128xf32, #tpu.memory_space<vmem>>) attributes {dimension_semantics = [#tpu.dimension_semantics<parallel>], iteration_bounds = array<i64: 1>, scalar_prefetch = 0 : i64, scratch_operands = 0 : i64, tpu.core_type = #tpu.core_type<tc>, window_params = [{transform_indices = @transform_0, window_bounds = array<i64: 16, 128>}, {transform_indices = @transform_1, window_bounds = array<i64: 16, 128>}, {transform_indices = @transform_2, window_bounds = array<i64: 1, 8, 128>}]} {
    %c0 = arith.constant 0 : index
    %c0_0 = arith.constant 0 : index
    %0 = vector.load %arg1[%c0, %c0_0] : memref<16x128xf32, #tpu.memory_space<vmem>>, vector<16x128xf32>
    %c0_1 = arith.constant 0 : index
    %c0_2 = arith.constant 0 : index
    %1 = vector.load %arg2[%c0_1, %c0_2] : memref<16x128xf32, #tpu.memory_space<vmem>>, vector<16x128xf32>
    %2 = math.absf %0 : vector<16x128xf32>
    %cst = arith.constant 0.000000e+00 : f32
    %3 = vector.broadcast %cst : f32 to vector<16x128xf32>
    %4 = arith.subf %3, %2 : vector<16x128xf32>
    %5 = math.exp %4 : vector<16x128xf32>
    %cst_3 = arith.constant 0.000000e+00 : f32
    %6 = vector.broadcast %cst_3 : f32 to vector<16x128xf32>
    %7 = arith.maximumf %0, %6 : vector<16x128xf32>
    %8 = arith.mulf %0, %1 : vector<16x128xf32>
    %9 = arith.subf %7, %8 : vector<16x128xf32>
    %10 = math.log1p %5 : vector<16x128xf32>
    %11 = arith.addf %9, %10 : vector<16x128xf32>
    %cst_4 = arith.constant 1.000000e+00 : f32
    %12 = vector.broadcast %cst_4 : f32 to vector<16x128xf32>
    %13 = arith.addf %12, %5 : vector<16x128xf32>
    %14 = tpu.reciprocal %13 {approx = true} : vector<16x128xf32> -> vector<16x128xf32>
    %15 = arith.mulf %13, %14 : vector<16x128xf32>
    %cst_5 = arith.constant 2.000000e+00 : f32
    %16 = vector.broadcast %cst_5 : f32 to vector<16x128xf32>
    %17 = arith.subf %16, %15 : vector<16x128xf32>
    %18 = arith.mulf %14, %17 : vector<16x128xf32>
    %cst_6 = arith.constant 0.000000e+00 : f32
    %19 = vector.broadcast %cst_6 : f32 to vector<16x128xf32>
    %20 = arith.cmpf oge, %0, %19 : vector<16x128xf32>
    %21 = arith.mulf %5, %18 : vector<16x128xf32>
    %22 = arith.select %20, %18, %21 : vector<16x128xi1>, vector<16x128xf32>
    %23 = arith.mulf %1, %22 : vector<16x128xf32>
    %cst_7 = arith.constant 1.000000e+00 : f32
    %24 = vector.broadcast %cst_7 : f32 to vector<16x128xf32>
    %25 = arith.subf %24, %1 : vector<16x128xf32>
    %cst_8 = arith.constant 1.000000e+00 : f32
    %26 = vector.broadcast %cst_8 : f32 to vector<16x128xf32>
    %27 = arith.subf %26, %22 : vector<16x128xf32>
    %28 = arith.mulf %25, %27 : vector<16x128xf32>
    %29 = arith.addf %23, %28 : vector<16x128xf32>
    %cst_9 = arith.constant 2.500000e-01 : f32
    %30 = vector.broadcast %cst_9 : f32 to vector<16x128xf32>
    %31 = arith.mulf %1, %30 : vector<16x128xf32>
    %cst_10 = arith.constant 1.000000e+00 : f32
    %32 = vector.broadcast %cst_10 : f32 to vector<16x128xf32>
    %33 = arith.subf %32, %1 : vector<16x128xf32>
    %cst_11 = arith.constant 7.500000e-01 : f32
    %34 = vector.broadcast %cst_11 : f32 to vector<16x128xf32>
    %35 = arith.mulf %33, %34 : vector<16x128xf32>
    %36 = arith.addf %31, %35 : vector<16x128xf32>
    %cst_12 = arith.constant 1.000000e+00 : f32
    %37 = vector.broadcast %cst_12 : f32 to vector<16x128xf32>
    %38 = arith.subf %37, %29 : vector<16x128xf32>
    %cst_13 = arith.constant 0.000000e+00 : f32
    %39 = vector.broadcast %cst_13 : f32 to vector<16x128xf32>
    %40 = arith.maximumf %38, %39 : vector<16x128xf32>
    %41 = arith.mulf %11, %36 : vector<16x128xf32>
    %42 = math.sqrt %40 : vector<16x128xf32>
    %43 = arith.mulf %40, %42 : vector<16x128xf32>
    %44 = arith.mulf %41, %43 : vector<16x128xf32>
    %45 = vector.shape_cast %44 : vector<16x128xf32> to vector<2x8x128xf32>
    %cst_14 = arith.constant dense<0.000000e+00> : vector<8x128xf32>
    %46 = vector.multi_reduction <add>, %45, %cst_14 [0] : vector<2x8x128xf32> to vector<8x128xf32>
    %c0_15 = arith.constant 0 : index
    %c0_16 = arith.constant 0 : index
    %c0_17 = arith.constant 0 : index
    %47 = vector.load %arg3[%c0_15, %c0_16, %c0_17] : memref<1x8x128xf32, #tpu.memory_space<vmem>>, vector<1x8x128xf32>
    %48 = vector.shape_cast %47 : vector<1x8x128xf32> to vector<8x128xf32>
    %49 = vector.shape_cast %46 : vector<8x128xf32> to vector<1x8x128xf32>
    tpu.vector_store %arg3[%c0_15, %c0_16, %c0_17], %49 {strides = array<i32>} : memref<1x8x128xf32, #tpu.memory_space<vmem>>, vector<1x8x128xf32>,
    return
  }
  func.func @transform_0(%arg0: i32) -> (i32, i32) {
    %c0_i32 = arith.constant 0 : i32
    %c0_i32_0 = arith.constant 0 : i32
    return %arg0, %c0_i32 : i32, i32
  }
  func.func @transform_1(%arg0: i32) -> (i32, i32) {
    %c0_i32 = arith.constant 0 : i32
    %c0_i32_0 = arith.constant 0 : i32
    return %arg0, %c0_i32 : i32, i32
  }
  func.func @transform_2(%arg0: i32) -> (i32, i32, i32) {
    %c0_i32 = arith.constant 0 : i32
    %c0_i32_0 = arith.constant 0 : i32
    %c0_i32_1 = arith.constant 0 : i32
    return %arg0, %c0_i32, %c0_i32_0 : i32, i32, i32
  }
}

</mosaic_0001>

<bundles_post_ra>
// kernel: focal_loss.1
= control target key start
LH: loop header
LB: loop body
LE: loop exit
PB: predicated region body
PF: predicated region fallthrough
CT: control target
= control target key end

     0   :  { %s169_s0 = inlined_call_operand.vmem [shape: f32[16,128], index: 0, kind: input, shape index: {}]   ;;  %s170_s1 = inlined_call_operand.vmem [shape: f32[16,128], index: 1, kind: input, shape index: {}]   ;;  %s171_s2 = inlined_call_operand.vmem [shape: f32[1,8,128], index: 2, kind: output, shape index: {}]  }
   0x1   :  { %v145_v0 = vld [vmem:[%s169_s0] sm:$0xff]  ;;  %v150_v1 = vld [vmem:[%s169_s0 + $0x8] sm:$0xff] }
   0x2   :  { %v15_v2 = vand.u32 2147483647, %v145_v0  ;;  %v16_v3 = vand.u32 2147483647, %v150_v1  ;;  %v13_v18 = vld [vmem:[%s170_s1] sm:$0xff]  ;;  %v14_v20 = vld [vmem:[%s170_s1 + $0x8] sm:$0xff] }
   0x3   :  { %vm59_vm0 = vcmp.ge.f32.partialorder %v145_v0, 0.0  ;;  %vm60_vm1 = vcmp.ge.f32.partialorder %v150_v1, 0.0  ;;  %v67_v24 = vsub.f32 1.0, %v13_v18  ;;  %v68_v26 = vsub.f32 1.0, %v14_v20 }
   0x4   :  { %v17_v4 = vsub.f32 0.0, %v15_v2  ;;  %v18_v5 = vsub.f32 0.0, %v16_v3  ;;  %v23_v48 = vmax.f32 %v145_v0, 0.0  ;;  %v25_v49 = vmul.f32 %v13_v18, %v145_v0 }
   0x5   :  { %v24_v50 = vmax.f32 %v150_v1, 0.0  ;;  %v26_v51 = vmul.f32 %v14_v20, %v150_v1  ;;  %v75_v57 = vmul.f32 0.25, %v13_v18  ;;  %v77_v58 = vmul.f32 0.75, %v67_v24 }
   0x6   :  { %v19_v6 = vmul.f32 1.442695, %v17_v4  ;;  %v21_v7 = vmul.f32 1.442695, %v18_v5  ;;  %v27_v56 = vsub.f32 %v23_v48, %v25_v49  ;;  %v76_v61 = vmul.f32 0.25, %v14_v20 }
   0x7   :  { %v28_v59 = vsub.f32 %v24_v50, %v26_v51  ;;  %v78_v62 = vmul.f32 0.75, %v68_v26  ;;  %v79_v2 = vadd.f32 %v77_v58, %v75_v57 }
   0x8   :  { %111 = vpow2.f32 %v19_v6 }
   0x9   :  { %113 = vpow2.f32 %v21_v7  ;;  %v80_v5 = vadd.f32 %v78_v62, %v76_v61 }
  0x12   :  { %v112_v8 = vpop.eup %111 }
  0x13   :  { %v114_v9 = vpop.eup %113  ;;  %v29_v10 = vadd.f32 1.0, %v112_v8  ;;  %v32_v34 = vmul.f32 -0.5, %v112_v8  ;;  %v35_v43 = vand.u32 2147483647, %v112_v8 }
  0x14   :  { %v38_v11 = vadd.f32 1.0, %v114_v9  ;;  %v41_v36 = vmul.f32 -0.5, %v114_v9  ;;  %v44_v47 = vand.u32 2147483647, %v114_v9 }
  0x15   :  { %115 = vrcp.f32 %v29_v10  ;;  %v33_v40 = vadd.f32 1.0, %v32_v34  ;;  %vm36_vm2 = vcmp.lt.f32.partialorder %v35_v43, 0.0004427343 }
  0x16   :  { %117 = vrcp.f32 %v38_v11  ;;  %v42_v44 = vadd.f32 1.0, %v41_v36  ;;  %vm45_vm3 = vcmp.lt.f32.partialorder %v44_v47, 0.0004427343 }
  0x17   :  { %119 = vlog2.f32 %v29_v10  ;;  %v34_v53 = vmul.f32 %v112_v8, %v33_v40 }
  0x18   :  { %121 = vlog2.f32 %v38_v11  ;;  %v43_v55 = vmul.f32 %v114_v9, %v42_v44 }
  0x1f   :  { %v116_v12 = vpop.eup %115 }
  0x20   :  { %v118_v13 = vpop.eup %117  ;;  %v53_v14 = vmul.f32 %v116_v12, %v29_v10 }
  0x21   :  { %v54_v15 = vmul.f32 %v118_v13, %v38_v11  ;;  %v120_v42 = vpop.eup %119 }
  0x22   :  { %v55_v16 = vsub.f32 2.0, %v53_v14  ;;  %v122_v46 = vpop.eup %121  ;;  %v31_v52 = vmul.f32 0.6931472, %v120_v42 }
  0x23   :  { %v56_v17 = vsub.f32 2.0, %v54_v15  ;;  %v40_v54 = vmul.f32 0.6931472, %v122_v46 }
  0x24   :  { %v57_v19 = vmul.f32 %v116_v12, %v55_v16  ;;  %v37_v60 = vsel %vm36_vm2, %v34_v53, %v31_v52 }
  0x25   :  { %v58_v21 = vmul.f32 %v118_v13, %v56_v17  ;;  %v46_v63 = vsel %vm45_vm3, %v43_v55, %v40_v54  ;;  %v47_v0 = vadd.f32 %v37_v60, %v27_v56 }
  0x26   :  { %v61_v22 = vmul.f32 %v112_v8, %v57_v19  ;;  %v48_v4 = vadd.f32 %v46_v63, %v28_v59 }
  0x27   :  { %v62_v23 = vmul.f32 %v114_v9, %v58_v21  ;;  %v85_v10 = vmul.f32 %v79_v2, %v47_v0 }
  0x28   :  { %v63_v25 = vsel %vm59_vm0, %v57_v19, %v61_v22  ;;  %v86_v12 = vmul.f32 %v80_v5, %v48_v4 }
  0x29   :  { %v64_v27 = vsel %vm60_vm1, %v58_v21, %v62_v23  ;;  %v65_v28 = vmul.f32 %v63_v25, %v13_v18  ;;  %v69_v29 = vsub.f32 1.0, %v63_v25 }
  0x2a   :  { %v66_v30 = vmul.f32 %v64_v27, %v14_v20  ;;  %v70_v31 = vsub.f32 1.0, %v64_v27 }
  0x2b   :  { %v71_v32 = vmul.f32 %v69_v29, %v67_v24 }
  0x2c   :  { %v72_v33 = vmul.f32 %v70_v31, %v68_v26 }
  0x2d   :  { %v73_v35 = vadd.f32 %v71_v32, %v65_v28 }
  0x2e   :  { %v74_v37 = vadd.f32 %v72_v33, %v66_v30 }
  0x2f   :  { %v81_v38 = vsub.f32 1.0, %v73_v35 }
  0x30   :  { %v82_v39 = vsub.f32 1.0, %v74_v37 }
  0x31   :  { %v83_v41 = vmax.f32 %v81_v38, 0.0 }
  0x32   :  { %v84_v45 = vmax.f32 %v82_v39, 0.0 }
  0x33   :  { %123 = vrsqrt.f32 %v83_v41  ;;  %vm89_vm4 = vcmp.eq.f32.partialorder %v83_v41, inf  ;;  %v92_v1 = vand.u32 2147483648, %v83_v41  ;;  %vm91_vm5 = vcmp.eq.f32.partialorder %v83_v41, 0.0 }
  0x34   :  { %125 = vrsqrt.f32 %v84_v45  ;;  %vm96_vm6 = vcmp.eq.f32.partialorder %v84_v45, inf  ;;  %v99_v8 = vand.u32 2147483648, %v84_v45  ;;  %vm98_vm7 = vcmp.eq.f32.partialorder %v84_v45, 0.0 }
  0x3d   :  { %v124_v3 = vpop.eup %123 }
  0x3e   :  { %v126_v6 = vpop.eup %125  ;;  %v88_v7 = vmul.f32 %v124_v3, %v83_v41 }
  0x3f   :  { %v95_v9 = vmul.f32 %v126_v6, %v84_v45 }
  0x40   :  { %v90_v11 = vsel %vm89_vm4, %v83_v41, %v88_v7 }
  0x41   :  { %v93_v13 = vsel %vm91_vm5, %v92_v1, %v90_v11  ;;  %v97_v14 = vsel %vm96_vm6, %v84_v45, %v95_v9 }
  0x42   :  { %v100_v15 = vsel %vm98_vm7, %v99_v8, %v97_v14  ;;  %v101_v16 = vmul.f32 %v93_v13, %v83_v41 }
  0x43   :  { %v102_v17 = vmul.f32 %v100_v15, %v84_v45 }
  0x44   :  { %v103_v18 = vmul.f32 %v101_v16, %v85_v10 }
  0x45   :  { %v104_v19 = vmul.f32 %v102_v17, %v86_v12 }
  0x47   :  { %v105_v20 = vadd.f32 %v104_v19, %v103_v18 }
  0x49   :  { %106 = vst [vmem:[%s171_s2] sm:$0xff] %v105_v20 }

</bundles_post_ra>
